<compile_context>
chip_gen: v7x
topology: tpu7x:2x2x1
jax: 0.10.0
libtpu: 0.0.40
codegen_flags: <defaults>
</compile_context>

<pallas_src>
import jax
import jax.numpy as jnp
from jax.experimental import pallas as pl
from jax.experimental.pallas import tpu as pltpu


def _round_up(x, m):
    return ((x + m - 1) // m) * m


def _round_down(x, m):
    return (x // m) * m


def trivec_score_kernel(h1, h2, h3, t1, t2, t3, r1, r2, r3, o_ref):
    # Fused triple products (VPU) -> single cross-lane reduction (XLU).
    prod = (
        h1[...] * r1[...] * t3[...]
        + h2[...] * r2[...] * t2[...]
        + h3[...] * r3[...] * t1[...]
    )
    scores = jnp.sum(prod, axis=1)      # (TB,)
    o_ref[...] = scores[None, :]        # lane-dense (1, TB) store


def trivec_forward(data, ent_1, ent_2, ent_3, rel_1, rel_2, rel_3, *, block_b=512):
    """data: (B, 3) int32 triples [head, rel, tail]. Returns (B,) float32 scores."""
    B = data.shape[0]
    dim = ent_1.shape[1]

    data = data.astype(jnp.int32)
    h_idx = data[:, 0]
    r_idx = data[:, 1]
    t_idx = data[:, 2]

    # Batch tile: multiple of 128 (unmasked lane-dense output stores), big
    # enough to amortize the ~0.35 us/step overhead, capped by a VMEM budget
    # (9 double-buffered f32 input tiles must stay well under the default
    # scoped-VMEM limit on v5e/v6e/v7x).
    vmem_budget = 12 << 20                       # bytes for the 9x2 input buffers
    tb_cap = max(128, _round_down(vmem_budget // (9 * 2 * dim * 4), 128))
    tb = max(128, min(_round_up(block_b, 128), _round_up(B, 128), tb_cap))
    b_pad = _round_up(B, tb)

    # Pad the (cheap, 1-D) index vectors before the gather so the gathered
    # (b_pad, dim) arrays come out already padded — no big pad copies.
    if b_pad != B:
        pad = (0, b_pad - B)
        h_idx = jnp.pad(h_idx, pad)              # index 0 is a valid row
        r_idx = jnp.pad(r_idx, pad)
        t_idx = jnp.pad(t_idx, pad)

    # Pre-gather embedding rows with XLA; the kernel then streams 9
    # contiguous (b_pad, dim) arrays.
    h1, h2, h3 = ent_1[h_idx], ent_2[h_idx], ent_3[h_idx]
    t1, t2, t3 = ent_1[t_idx], ent_2[t_idx], ent_3[t_idx]
    r1, r2, r3 = rel_1[r_idx], rel_2[r_idx], rel_3[r_idx]

    num_tiles = b_pad // tb
    emb_spec = pl.BlockSpec((tb, dim), lambda i: (i, 0))
    out_spec = pl.BlockSpec((1, tb), lambda i: (i, 0))

    out = pl.pallas_call(
        trivec_score_kernel,
        out_shape=jax.ShapeDtypeStruct((num_tiles, tb), jnp.float32),
        grid_spec=pltpu.PrefetchScalarGridSpec(
            num_scalar_prefetch=0,
            grid=(num_tiles,),
            in_specs=[emb_spec] * 9,
            out_specs=out_spec,
        ),
        compiler_params=pltpu.CompilerParams(
            dimension_semantics=("parallel",),
        ),
    )(h1, h2, h3, t1, t2, t3, r1, r2, r3)

    return out.reshape(-1)[:B]


def trivec_forward_ref(data, ent_1, ent_2, ent_3, rel_1, rel_2, rel_3):
    """Pure-JAX reference implementation (mirrors the PyTorch forward)."""
    h_idx = data[:, 0]
    r_idx = data[:, 1]
    t_idx = data[:, 2]
    h1, h2, h3 = ent_1[h_idx], ent_2[h_idx], ent_3[h_idx]
    t1, t2, t3 = ent_1[t_idx], ent_2[t_idx], ent_3[t_idx]
    r1, r2, r3 = rel_1[r_idx], rel_2[r_idx], rel_3[r_idx]
    return (
        (h1 * r1 * t3).sum(axis=1)
        + (h2 * r2 * t2).sum(axis=1)
        + (h3 * r3 * t1).sum(axis=1)
    )


if __name__ == "__main__":
    ent_total = 10
    rel_total = 5
    dim = 128   # lane-aligned embedding size
    B = 8

    key = jax.random.PRNGKey(0)
    keys = jax.random.split(key, 9)

    # Deterministic synthetic parameter init (stand-in for EmbeddingsInitializer).
    ent_1 = jax.random.normal(keys[0], (ent_total, dim), dtype=jnp.float32)
    ent_2 = jax.random.normal(keys[1], (ent_total, dim), dtype=jnp.float32)
    ent_3 = jax.random.normal(keys[2], (ent_total, dim), dtype=jnp.float32)
    rel_1 = jax.random.normal(keys[3], (rel_total, dim), dtype=jnp.float32)
    rel_2 = jax.random.normal(keys[4], (rel_total, dim), dtype=jnp.float32)
    rel_3 = jax.random.normal(keys[5], (rel_total, dim), dtype=jnp.float32)

    # data: (B, 3) int32 triples [head, rel, tail]
    h = jax.random.randint(keys[6], (B,), 0, ent_total, dtype=jnp.int32)
    r = jax.random.randint(keys[7], (B,), 0, rel_total, dtype=jnp.int32)
    t = jax.random.randint(keys[8], (B,), 0, ent_total, dtype=jnp.int32)
    data = jnp.stack([h, r, t], axis=1)

    # Main check (single 128-wide tile, batch padded via index padding).
    score = trivec_forward(data, ent_1, ent_2, ent_3, rel_1, rel_2, rel_3)
    score = jax.block_until_ready(score)
    score_ref = trivec_forward_ref(data, ent_1, ent_2, ent_3, rel_1, rel_2, rel_3)
    assert score.shape == (B,)
    assert jnp.allclose(score, score_ref, atol=1e-4, rtol=1e-4), (score, score_ref)

    # Multi-tile path check (block_b forced small to exercise the grid loop).
    B2 = 300
    k2 = jax.random.split(jax.random.PRNGKey(1), 3)
    h2i = jax.random.randint(k2[0], (B2,), 0, ent_total, dtype=jnp.int32)
    r2i = jax.random.randint(k2[1], (B2,), 0, rel_total, dtype=jnp.int32)
    t2i = jax.random.randint(k2[2], (B2,), 0, ent_total, dtype=jnp.int32)
    data2 = jnp.stack([h2i, r2i, t2i], axis=1)
    score2 = trivec_forward(data2, ent_1, ent_2, ent_3, rel_1, rel_2, rel_3, block_b=128)
    score2 = jax.block_until_ready(score2)
    score2_ref = trivec_forward_ref(data2, ent_1, ent_2, ent_3, rel_1, rel_2, rel_3)
    assert jnp.allclose(score2, score2_ref, atol=1e-4, rtol=1e-4), (score2, score2_ref)

    print("KERNEL_OK")
</pallas_src>

<mosaic_0001>
module attributes {stable_mosaic.version = 11 : i64} {
  func.func @trivec_score_kernel(%arg0: i32, %arg1: memref<128x128xf32, #tpu.memory_space<vmem>>, %arg2: memref<128x128xf32, #tpu.memory_space<vmem>>, %arg3: memref<128x128xf32, #tpu.memory_space<vmem>>, %arg4: memref<128x128xf32, #tpu.memory_space<vmem>>, %arg5: memref<128x128xf32, #tpu.memory_space<vmem>>, %arg6: memref<128x128xf32, #tpu.memory_space<vmem>>, %arg7: memref<128x128xf32, #tpu.memory_space<vmem>>, %arg8: memref<128x128xf32, #tpu.memory_space<vmem>>, %arg9: memref<128x128xf32, #tpu.memory_space<vmem>>, %arg10: memref<1x128xf32, #tpu.memory_space<vmem>>) attributes {dimension_semantics = [#tpu.dimension_semantics<parallel>], iteration_bounds = array<i64: 1>, scalar_prefetch = 0 : i64, scratch_operands = 0 : i64, tpu.core_type = #tpu.core_type<tc>, window_params = [{transform_indices = @transform_0, window_bounds = array<i64: 128, 128>}, {transform_indices = @transform_1, window_bounds = array<i64: 128, 128>}, {transform_indices = @transform_2, window_bounds = array<i64: 128, 128>}, {transform_indices = @transform_3, window_bounds = array<i64: 128, 128>}, {transform_indices = @transform_4, window_bounds = array<i64: 128, 128>}, {transform_indices = @transform_5, window_bounds = array<i64: 128, 128>}, {transform_indices = @transform_6, window_bounds = array<i64: 128, 128>}, {transform_indices = @transform_7, window_bounds = array<i64: 128, 128>}, {transform_indices = @transform_8, window_bounds = array<i64: 128, 128>}, {transform_indices = @transform_9, window_bounds = array<i64: 1, 128>}]} {
    %c0 = arith.constant 0 : index
    %c0_0 = arith.constant 0 : index
    %0 = vector.load %arg1[%c0, %c0_0] : memref<128x128xf32, #tpu.memory_space<vmem>>, vector<128x128xf32>
    %c0_1 = arith.constant 0 : index
    %c0_2 = arith.constant 0 : index
    %1 = vector.load %arg7[%c0_1, %c0_2] : memref<128x128xf32, #tpu.memory_space<vmem>>, vector<128x128xf32>
    %2 = arith.mulf %0, %1 : vector<128x128xf32>
    %c0_3 = arith.constant 0 : index
    %c0_4 = arith.constant 0 : index
    %3 = vector.load %arg6[%c0_3, %c0_4] : memref<128x128xf32, #tpu.memory_space<vmem>>, vector<128x128xf32>
    %4 = arith.mulf %2, %3 : vector<128x128xf32>
    %c0_5 = arith.constant 0 : index
    %c0_6 = arith.constant 0 : index
    %5 = vector.load %arg2[%c0_5, %c0_6] : memref<128x128xf32, #tpu.memory_space<vmem>>, vector<128x128xf32>
    %c0_7 = arith.constant 0 : index
    %c0_8 = arith.constant 0 : index
    %6 = vector.load %arg8[%c0_7, %c0_8] : memref<128x128xf32, #tpu.memory_space<vmem>>, vector<128x128xf32>
    %7 = arith.mulf %5, %6 : vector<128x128xf32>
    %c0_9 = arith.constant 0 : index
    %c0_10 = arith.constant 0 : index
    %8 = vector.load %arg5[%c0_9, %c0_10] : memref<128x128xf32, #tpu.memory_space<vmem>>, vector<128x128xf32>
    %9 = arith.mulf %7, %8 : vector<128x128xf32>
    %10 = arith.addf %4, %9 : vector<128x128xf32>
    %c0_11 = arith.constant 0 : index
    %c0_12 = arith.constant 0 : index
    %11 = vector.load %arg3[%c0_11, %c0_12] : memref<128x128xf32, #tpu.memory_space<vmem>>, vector<128x128xf32>
    %c0_13 = arith.constant 0 : index
    %c0_14 = arith.constant 0 : index
    %12 = vector.load %arg9[%c0_13, %c0_14] : memref<128x128xf32, #tpu.memory_space<vmem>>, vector<128x128xf32>
    %13 = arith.mulf %11, %12 : vector<128x128xf32>
    %c0_15 = arith.constant 0 : index
    %c0_16 = arith.constant 0 : index
    %14 = vector.load %arg4[%c0_15, %c0_16] : memref<128x128xf32, #tpu.memory_space<vmem>>, vector<128x128xf32>
    %15 = arith.mulf %13, %14 : vector<128x128xf32>
    %16 = arith.addf %10, %15 : vector<128x128xf32>
    %cst = arith.constant dense<0.000000e+00> : vector<128xf32>
    %17 = vector.multi_reduction <add>, %16, %cst [1] : vector<128x128xf32> to vector<128xf32>
    %18 = vector.shape_cast %17 : vector<128xf32> to vector<1x128xf32>
    %c0_17 = arith.constant 0 : index
    %c0_18 = arith.constant 0 : index
    %19 = vector.load %arg10[%c0_17, %c0_18] : memref<1x128xf32, #tpu.memory_space<vmem>>, vector<1x128xf32>
    tpu.vector_store %arg10[%c0_17, %c0_18], %18 {strides = array<i32>} : memref<1x128xf32, #tpu.memory_space<vmem>>, vector<1x128xf32>,
    return
  }
  func.func @transform_0(%arg0: i32) -> (i32, i32) {
    %c0_i32 = arith.constant 0 : i32
    %c0_i32_0 = arith.constant 0 : i32
    return %arg0, %c0_i32 : i32, i32
  }
  func.func @transform_1(%arg0: i32) -> (i32, i32) {
    %c0_i32 = arith.constant 0 : i32
    %c0_i32_0 = arith.constant 0 : i32
    return %arg0, %c0_i32 : i32, i32
  }
  func.func @transform_2(%arg0: i32) -> (i32, i32) {
    %c0_i32 = arith.constant 0 : i32
    %c0_i32_0 = arith.constant 0 : i32
    return %arg0, %c0_i32 : i32, i32
  }
  func.func @transform_3(%arg0: i32) -> (i32, i32) {
    %c0_i32 = arith.constant 0 : i32
    %c0_i32_0 = arith.constant 0 : i32
    return %arg0, %c0_i32 : i32, i32
  }
  func.func @transform_4(%arg0: i32) -> (i32, i32) {
    %c0_i32 = arith.constant 0 : i32
    %c0_i32_0 = arith.constant 0 : i32
    return %arg0, %c0_i32 : i32, i32
  }
  func.func @transform_5(%arg0: i32) -> (i32, i32) {
    %c0_i32 = arith.constant 0 : i32
    %c0_i32_0 = arith.constant 0 : i32
    return %arg0, %c0_i32 : i32, i32
  }
  func.func @transform_6(%arg0: i32) -> (i32, i32) {
    %c0_i32 = arith.constant 0 : i32
    %c0_i32_0 = arith.constant 0 : i32
    return %arg0, %c0_i32 : i32, i32
  }
  func.func @transform_7(%arg0: i32) -> (i32, i32) {
    %c0_i32 = arith.constant 0 : i32
    %c0_i32_0 = arith.constant 0 : i32
    return %arg0, %c0_i32 : i32, i32
  }
  func.func @transform_8(%arg0: i32) -> (i32, i32) {
    %c0_i32 = arith.constant 0 : i32
    %c0_i32_0 = arith.constant 0 : i32
    return %arg0, %c0_i32 : i32, i32
  }
  func.func @transform_9(%arg0: i32) -> (i32, i32) {
    %c0_i32 = arith.constant 0 : i32
    %c0_i32_0 = arith.constant 0 : i32
    return %arg0, %c0_i32 : i32, i32
  }
}

</mosaic_0001>

<bundles_post_ra>
// kernel: tpu_custom_call.1
= control target key start
LH: loop header
LB: loop body
LE: loop exit
PB: predicated region body
PF: predicated region fallthrough
CT: control target
= control target key end

     0   :  { %14 = vsyncpa [#allocation3], 0  ;;  %s1124_s0 = inlined_call_operand.hbm [shape: f32[128,128], index: 0, kind: input, shape index: {}]   ;;  %s1125_s1 = inlined_call_operand.hbm [shape: f32[128,128], index: 1, kind: input, shape index: {}]   ;;  %s1126_s2 = inlined_call_operand.hbm [shape: f32[128,128], index: 2, kind: input, shape index: {}]   ;;  %s1127_s3 = inlined_call_operand.hbm [shape: f32[128,128], index: 3, kind: input, shape index: {}]   ;;  %s1128_s4 = inlined_call_operand.hbm [shape: f32[128,128], index: 4, kind: input, shape index: {}]   ;;  %s1129_s5 = inlined_call_operand.hbm [shape: f32[128,128], index: 5, kind: input, shape index: {}]   ;;  %s1130_s6 = inlined_call_operand.hbm [shape: f32[128,128], index: 6, kind: input, shape index: {}]   ;;  %s1131_s7 = inlined_call_operand.hbm [shape: f32[128,128], index: 7, kind: input, shape index: {}]   ;;  %s1132_s8 = inlined_call_operand.hbm [shape: f32[128,128], index: 8, kind: input, shape index: {}]   ;;  %s1133_s9 = inlined_call_operand.hbm [shape: f32[1,128], index: 9, kind: output, shape index: {}]  }
   0x1   :  { %15 = vsyncpa [#allocation6], 0 }
   0x2   :  { %16 = vsyncpa [#allocation9], 0 }
   0x3   :  { %17 = vsyncpa [#allocation12], 0 }
   0x4   :  { %18 = vsyncpa [#allocation15], 0 }
   0x5   :  { %19 = vsyncpa [#allocation4], 0  ;;  %s851_s30 = smov [#allocation5]   ;;  %s852_s11 = smov [#allocation8]  }
   0x6   :  { %s37_s10 = sshll.u32 %s851_s30, 4  ;;  %s61_s12 = sshll.u32 %s852_s11, 4  ;;  %s38_s10 = int_to_ptr.vmem [resolvable:$true] %s37_s10  ;;  %s913_s12 = int_to_ptr.vmem [resolvable:$true] %s61_s12 }
   0x7   :  { %s619_s15 = scalar_lea.hbm %s1125_s1, 2048 }
   0x8   :  { %p620_p0 = scmp.ne.s32.totalorder %s1125_s1, %s619_s15  ;;  %p623_p1 = scmp.lt.u32.totalorder %s619_s15, %s1125_s1 }
   0xa   :  { %p625_p2 = pnand %p623_p1, %p620_p0 }
   0xc   :  { %628 = shalt.err (!%p625_p2)
}
   0xd   :  { %s629_s20 = scalar_lea.vmem %s38_s10, 2048  ;;  %p634_p4 = scmp.lt.s32.totalorder %s38_s10, %s38_s10 }
   0xe   :  { %p630_p3 = scmp.ne.s32.totalorder %s38_s10, %s629_s20  ;;  %p635_p5 = scmp.lt.s32.totalorder %s629_s20, %s629_s20 }
  0x10   :  { %p636_p6 = por %p635_p5, %p634_p4 }
  0x12   :  { %p637_p7 = pnand %p636_p6, %p630_p3 }
  0x14   :  { %640 = shalt.err (!%p637_p7)
}
  0x15   :  { %s853_s21 = smov 128   ;;  %s854_s22 = smov 8  }
  0x16   :  { %43 = dma.hbm_to_vmem [thread:$0]  %s1125_s1, 2048, %s38_s10, [#allocation6], %s853_s21, %s853_s21, %s854_s22  }
  0x17   :  { %s641_s27 = scalar_lea.hbm %s1127_s3, 2048 }
  0x18   :  { %p642_p8 = scmp.ne.s32.totalorder %s1127_s3, %s641_s27  ;;  %p645_p9 = scmp.lt.u32.totalorder %s641_s27, %s1127_s3 }
  0x1a   :  { %p647_p10 = pnand %p645_p9, %p642_p8 }
  0x1c   :  { %650 = shalt.err (!%p647_p10)
}
  0x1d   :  { %s651_s13 = scalar_lea.vmem %s913_s12, 2048  ;;  %p656_p12 = scmp.lt.s32.totalorder %s913_s12, %s913_s12 }
  0x1e   :  { %p652_p11 = scmp.ne.s32.totalorder %s913_s12, %s651_s13  ;;  %p657_p13 = scmp.lt.s32.totalorder %s651_s13, %s651_s13 }
  0x20   :  { %p658_p0 = por %p657_p13, %p656_p12 }
  0x22   :  { %p659_p1 = pnand %p658_p0, %p652_p11 }
  0x24   :  { %662 = shalt.err (!%p659_p1)
}
  0x25   :  { %67 = dma.hbm_to_vmem [thread:$0]  %s1127_s3, 2048, %s913_s12, [#allocation9], %s853_s21, %s853_s21, %s854_s22  }
  0x26   :  { %s855_s14 = smov [#allocation11]   ;;  %s856_s16 = smov [#allocation14]  }
  0x27   :  { %s85_s15 = sshll.u32 %s855_s14, 4  ;;  %s109_s17 = sshll.u32 %s856_s16, 4  ;;  %s86_s15 = int_to_ptr.vmem [resolvable:$true] %s85_s15  ;;  %s950_s17 = int_to_ptr.vmem [resolvable:$true] %s109_s17 }
  0x28   :  { %s663_s20 = scalar_lea.hbm %s1129_s5, 2048 }
  0x29   :  { %p664_p2 = scmp.ne.s32.totalorder %s1129_s5, %s663_s20  ;;  %p667_p3 = scmp.lt.u32.totalorder %s663_s20, %s1129_s5 }
  0x2b   :  { %p669_p4 = pnand %p667_p3, %p664_p2 }
  0x2d   :  { %672 = shalt.err (!%p669_p4)
}
  0x2e   :  { %s673_s3 = scalar_lea.vmem %s86_s15, 2048  ;;  %p678_p6 = scmp.lt.s32.totalorder %s86_s15, %s86_s15 }
  0x2f   :  { %p674_p5 = scmp.ne.s32.totalorder %s86_s15, %s673_s3  ;;  %p679_p7 = scmp.lt.s32.totalorder %s673_s3, %s673_s3 }
  0x31   :  { %p680_p8 = por %p679_p7, %p678_p6 }
  0x33   :  { %p681_p9 = pnand %p680_p8, %p674_p5 }
  0x35   :  { %684 = shalt.err (!%p681_p9)
}
  0x36   :  { %91 = dma.hbm_to_vmem [thread:$0]  %s1129_s5, 2048, %s86_s15, [#allocation12], %s853_s21, %s853_s21, %s854_s22  }
  0x37   :  { %s685_s30 = scalar_lea.hbm %s1131_s7, 2048 }
  0x38   :  { %p686_p10 = scmp.ne.s32.totalorder %s1131_s7, %s685_s30  ;;  %p689_p11 = scmp.lt.u32.totalorder %s685_s30, %s1131_s7 }
  0x3a   :  { %p691_p12 = pnand %p689_p11, %p686_p10 }
  0x3c   :  { %694 = shalt.err (!%p691_p12)
}
  0x3d   :  { %s695_s14 = scalar_lea.vmem %s950_s17, 2048  ;;  %p700_p0 = scmp.lt.s32.totalorder %s950_s17, %s950_s17 }
  0x3e   :  { %p696_p13 = scmp.ne.s32.totalorder %s950_s17, %s695_s14  ;;  %p701_p1 = scmp.lt.s32.totalorder %s695_s14, %s695_s14 }
  0x40   :  { %p702_p2 = por %p701_p1, %p700_p0 }
  0x42   :  { %p703_p3 = pnand %p702_p2, %p696_p13 }
  0x44   :  { %706 = shalt.err (!%p703_p3)
}
  0x45   :  { %115 = dma.hbm_to_vmem [thread:$0]  %s1131_s7, 2048, %s950_s17, [#allocation15], %s853_s21, %s853_s21, %s854_s22  }
  0x46   :  { %s857_s16 = smov [#allocation2]   ;;  %s858_s19 = smov [#allocation7]  }
  0x47   :  { %s25_s18 = sshll.u32 %s857_s16, 4  ;;  %s49_s20 = sshll.u32 %s858_s19, 4  ;;  %s26_s18 = int_to_ptr.vmem [resolvable:$true] %s25_s18  ;;  %s987_s20 = int_to_ptr.vmem [resolvable:$true] %s49_s20 }
  0x48   :  { %s707_s25 = scalar_lea.hbm %s1124_s0, 2048 }
  0x49   :  { %p708_p4 = scmp.ne.s32.totalorder %s1124_s0, %s707_s25  ;;  %p711_p5 = scmp.lt.u32.totalorder %s707_s25, %s1124_s0 }
  0x4b   :  { %p713_p6 = pnand %p711_p5, %p708_p4 }
  0x4d   :  { %716 = shalt.err (!%p713_p6)
}
  0x4e   :  { %s717_s7 = scalar_lea.vmem %s26_s18, 2048  ;;  %p722_p8 = scmp.lt.s32.totalorder %s26_s18, %s26_s18 }
  0x4f   :  { %p718_p7 = scmp.ne.s32.totalorder %s26_s18, %s717_s7  ;;  %p723_p9 = scmp.lt.s32.totalorder %s717_s7, %s717_s7 }
  0x51   :  { %p724_p10 = por %p723_p9, %p722_p8 }
  0x53   :  { %p725_p11 = pnand %p724_p10, %p718_p7 }
  0x55   :  { %728 = shalt.err (!%p725_p11)
}
  0x56   :  { %31 = dma.hbm_to_vmem [thread:$0]  %s1124_s0, 2048, %s26_s18, [#allocation3], %s853_s21, %s853_s21, %s854_s22  }
  0x57   :  { %s729_s11 = scalar_lea.hbm %s1126_s2, 2048 }
  0x58   :  { %p730_p12 = scmp.ne.s32.totalorder %s1126_s2, %s729_s11  ;;  %p733_p13 = scmp.lt.u32.totalorder %s729_s11, %s1126_s2 }
  0x5a   :  { %p735_p0 = pnand %p733_p13, %p730_p12 }
  0x5c   :  { %738 = shalt.err (!%p735_p0)
}
  0x5d   :  { %s739_s5 = scalar_lea.vmem %s987_s20, 2048  ;;  %p744_p2 = scmp.lt.s32.totalorder %s987_s20, %s987_s20 }
  0x5e   :  { %p740_p1 = scmp.ne.s32.totalorder %s987_s20, %s739_s5  ;;  %p745_p3 = scmp.lt.s32.totalorder %s739_s5, %s739_s5 }
  0x60   :  { %p746_p4 = por %p745_p3, %p744_p2 }
  0x62   :  { %p747_p5 = pnand %p746_p4, %p740_p1 }
  0x64   :  { %750 = shalt.err (!%p747_p5)
}
  0x65   :  { %55 = dma.hbm_to_vmem [thread:$0]  %s1126_s2, 2048, %s987_s20, [#allocation6], %s853_s21, %s853_s21, %s854_s22  }
  0x66   :  { %s859_s16 = smov [#allocation10]   ;;  %s860_s19 = smov [#allocation13]  }
  0x67   :  { %s73_s18 = sshll.u32 %s859_s16, 4  ;;  %s97_s23 = sshll.u32 %s860_s19, 4  ;;  %s74_s18 = int_to_ptr.vmem [resolvable:$true] %s73_s18  ;;  %s1024_s23 = int_to_ptr.vmem [resolvable:$true] %s97_s23 }
  0x68   :  { %s751_s26 = scalar_lea.hbm %s1128_s4, 2048 }
  0x69   :  { %p752_p6 = scmp.ne.s32.totalorder %s1128_s4, %s751_s26  ;;  %p755_p7 = scmp.lt.u32.totalorder %s751_s26, %s1128_s4 }
  0x6b   :  { %p757_p8 = pnand %p755_p7, %p752_p6 }
  0x6d   :  { %760 = shalt.err (!%p757_p8)
}
  0x6e   :  { %s761_s2 = scalar_lea.vmem %s74_s18, 2048  ;;  %p766_p10 = scmp.lt.s32.totalorder %s74_s18, %s74_s18 }
  0x6f   :  { %p762_p9 = scmp.ne.s32.totalorder %s74_s18, %s761_s2  ;;  %p767_p11 = scmp.lt.s32.totalorder %s761_s2, %s761_s2 }
  0x71   :  { %p768_p12 = por %p767_p11, %p766_p10 }
  0x73   :  { %p769_p13 = pnand %p768_p12, %p762_p9 }
  0x75   :  { %772 = shalt.err (!%p769_p13)
}
  0x76   :  { %79 = dma.hbm_to_vmem [thread:$0]  %s1128_s4, 2048, %s74_s18, [#allocation9], %s853_s21, %s853_s21, %s854_s22  }
  0x77   :  { %s773_s30 = scalar_lea.hbm %s1130_s6, 2048 }
  0x78   :  { %p774_p0 = scmp.ne.s32.totalorder %s1130_s6, %s773_s30  ;;  %p777_p1 = scmp.lt.u32.totalorder %s773_s30, %s1130_s6 }
  0x7a   :  { %p779_p2 = pnand %p777_p1, %p774_p0 }
  0x7c   :  { %782 = shalt.err (!%p779_p2)
}
  0x7d   :  { %s783_s14 = scalar_lea.vmem %s1024_s23, 2048  ;;  %p788_p4 = scmp.lt.s32.totalorder %s1024_s23, %s1024_s23 }
  0x7e   :  { %p784_p3 = scmp.ne.s32.totalorder %s1024_s23, %s783_s14  ;;  %p789_p5 = scmp.lt.s32.totalorder %s783_s14, %s783_s14 }
  0x80   :  { %p790_p6 = por %p789_p5, %p788_p4 }
  0x82   :  { %p791_p7 = pnand %p790_p6, %p784_p3 }
  0x84   :  { %794 = shalt.err (!%p791_p7)
}
  0x85   :  { %103 = dma.hbm_to_vmem [thread:$0]  %s1130_s6, 2048, %s1024_s23, [#allocation12], %s853_s21, %s853_s21, %s854_s22  }
  0x86   :  { %s861_s0 = smov [#allocation16]   ;;  %s795_s19 = scalar_lea.hbm %s1132_s8, 2048 }
  0x87   :  { %s121_s15 = sshll.u32 %s861_s0, 4  ;;  %p796_p8 = scmp.ne.s32.totalorder %s1132_s8, %s795_s19  ;;  %s122_s15 = int_to_ptr.vmem [resolvable:$true] %s121_s15 }
  0x88   :  { %p799_p9 = scmp.lt.u32.totalorder %s795_s19, %s1132_s8 }
  0x8a   :  { %p801_p10 = pnand %p799_p9, %p796_p8 }
  0x8c   :  { %804 = shalt.err (!%p801_p10)
}
  0x8d   :  { %s805_s12 = scalar_lea.vmem %s122_s15, 2048  ;;  %p810_p12 = scmp.lt.s32.totalorder %s122_s15, %s122_s15 }
  0x8e   :  { %p806_p11 = scmp.ne.s32.totalorder %s122_s15, %s805_s12  ;;  %p811_p13 = scmp.lt.s32.totalorder %s805_s12, %s805_s12 }
  0x90   :  { %p812_p0 = por %p811_p13, %p810_p12 }
  0x92   :  { %p813_p1 = pnand %p812_p0, %p806_p11 }
  0x94   :  { %816 = shalt.err (!%p813_p1)
}
  0x95   :  { %127 = dma.hbm_to_vmem [thread:$0]  %s1132_s8, 2048, %s122_s15, [#allocation15], %s853_s21, %s853_s21, %s854_s22  }
  0x96   :  { %839 = dma.done.wait [#allocation3], 2048  }
  0x97   :  { %840 = vsyncadd [#allocation3], 4294965248 }
  0x98   :  { %841 = dma.done.wait [#allocation6], 4096  }
  0x99   :  { %842 = vsyncadd [#allocation6], 4294963200 }
  0x9a   :  { %843 = dma.done.wait [#allocation9], 4096  }
  0x9b   :  { %844 = vsyncadd [#allocation9], 4294963200 }
  0x9c   :  { %845 = dma.done.wait [#allocation12], 4096  }
  0x9d   :  { %846 = vsyncadd [#allocation12], 4294963200 }
  0x9e   :  { %847 = dma.done.wait [#allocation15], 4096  }
  0x9f   :  { %848 = vsyncadd [#allocation15], 4294963200  ;;  %v155_v0 = vld [vmem:[#allocation2] sm:$0xff]  ;;  %v157_v13 = vld [vmem:[#allocation2 + $0x10] sm:$0xff]  ;;  %vm486_vm0 = vcmask 130112   ;;  %vm493_vm1 = vcmask 195712  }
  0xa0   :  { %v171_v1 = vld [vmem:[#allocation13] sm:$0xff]  ;;  %v173_v14 = vld [vmem:[#allocation13 + $0x10] sm:$0xff]  ;;  %v156_v29 = vld [vmem:[#allocation2 + $0x8] sm:$0xff]  ;;  %vm500_vm2 = vcmask 261312   ;;  %vm507_vm3 = vcmask 326912   ;;  %vm514_vm4 = vcmask 392512  }
  0xa1   :  { %v203_v2 = vld [vmem:[#allocation11] sm:$0xff]  ;;  %v187_v3 = vmul.f32 %v171_v1, %v155_v0  ;;  %v205_v15 = vld [vmem:[#allocation11 + $0x10] sm:$0xff]  ;;  %v189_v17 = vmul.f32 %v173_v14, %v157_v13  ;;  %v172_v30 = vld [vmem:[#allocation13 + $0x8] sm:$0xff]  ;;  %vm521_vm5 = vcmask 458112   ;;  %vm528_vm6 = vcmask 523712   ;;  %s862_s8 = smov [#allocation17]  }
  0xa2   :  { %v235_v4 = vld [vmem:[#allocation5] sm:$0xff]  ;;  %v237_v18 = vld [vmem:[#allocation5 + $0x10] sm:$0xff]  ;;  %v204_v31 = vld [vmem:[#allocation11 + $0x8] sm:$0xff]  ;;  %v188_v33 = vmul.f32 %v172_v30, %v156_v29  ;;  %vm535_vm7 = vcmask 589312   ;;  %vm542_vm8 = vcmask 654912   ;;  %vm549_vm9 = vcmask 720512  }
  0xa3   :  { %v251_v5 = vld [vmem:[#allocation14] sm:$0xff]  ;;  %v219_v11 = vmul.f32 %v203_v2, %v187_v3  ;;  %v253_v19 = vld [vmem:[#allocation14 + $0x10] sm:$0xff]  ;;  %v221_v27 = vmul.f32 %v205_v15, %v189_v17  ;;  %v236_v34 = vld [vmem:[#allocation5 + $0x8] sm:$0xff]  ;;  %vm556_vm10 = vcmask 786112   ;;  %vm563_vm11 = vcmask 851712   ;;  %s594_s21 = sshll.u32 %s862_s8, 4  ;;  %s595_s21 = int_to_ptr.vmem [resolvable:$true] %s594_s21 }
  0xa4   :  { %v283_v6 = vld [vmem:[#allocation10] sm:$0xff]  ;;  %v267_v7 = vmul.f32 %v251_v5, %v235_v4  ;;  %v285_v20 = vld [vmem:[#allocation10 + $0x10] sm:$0xff]  ;;  %v269_v22 = vmul.f32 %v253_v19, %v237_v18  ;;  %v252_v35 = vld [vmem:[#allocation14 + $0x8] sm:$0xff]  ;;  %v220_v44 = vmul.f32 %v204_v31, %v188_v33  ;;  %vm570_vm12 = vcmask 917312   ;;  %s817_s22 = scalar_lea.vmem %s595_s21, 16  ;;  %s821_s27 = scalar_lea.vmem %s595_s21, 32 }
  0xa5   :  { %v331_v8 = vld [vmem:[#allocation7] sm:$0xff]  ;;  %v333_v23 = vld [vmem:[#allocation7 + $0x10] sm:$0xff]  ;;  %v284_v36 = vld [vmem:[#allocation10 + $0x8] sm:$0xff]  ;;  %v268_v39 = vmul.f32 %v252_v35, %v236_v34  ;;  %vm577_vm13 = vcmask 982912   ;;  %vm584_vm14 = vcmask 1048512   ;;  %p818_p2 = scmp.ne.s32.totalorder %s595_s21, %s817_s22  ;;  %p822_p3 = scmp.lt.s32.totalorder %s595_s21, %s595_s21 }
  0xa6   :  { %v347_v9 = vld [vmem:[#allocation16] sm:$0xff]  ;;  %v299_v16 = vmul.f32 %v283_v6, %v267_v7  ;;  %v349_v24 = vld [vmem:[#allocation16 + $0x10] sm:$0xff]  ;;  %v301_v32 = vmul.f32 %v285_v20, %v269_v22  ;;  %v332_v40 = vld [vmem:[#allocation7 + $0x8] sm:$0xff]  ;;  %p823_p4 = scmp.lt.s32.totalorder %s821_s27, %s817_s22 }
  0xa7   :  { %v379_v10 = vld [vmem:[#allocation8] sm:$0xff]  ;;  %v363_v12 = vmul.f32 %v347_v9, %v331_v8  ;;  %v381_v25 = vld [vmem:[#allocation8 + $0x10] sm:$0xff]  ;;  %v365_v28 = vmul.f32 %v349_v24, %v333_v23  ;;  %v348_v41 = vld [vmem:[#allocation16 + $0x8] sm:$0xff]  ;;  %v300_v49 = vmul.f32 %v284_v36, %v268_v39 }
  0xa8   :  { %v315_v26 = vadd.f32 %v299_v16, %v219_v11  ;;  %v380_v42 = vld [vmem:[#allocation8 + $0x8] sm:$0xff]  ;;  %v317_v43 = vadd.f32 %v301_v32, %v221_v27  ;;  %v364_v45 = vmul.f32 %v348_v41, %v332_v40  ;;  %v158_v46 = vld [vmem:[#allocation2 + $0x18] sm:$0xff]  ;;  %v159_v63 = vld [vmem:[#allocation2 + $0x20] sm:$0xff]  ;;  %p824_p5 = por %p823_p4, %p822_p3 }
  0xa9   :  { %v395_v21 = vmul.f32 %v379_v10, %v363_v12  ;;  %v397_v38 = vmul.f32 %v381_v25, %v365_v28  ;;  %v174_v47 = vld [vmem:[#allocation13 + $0x18] sm:$0xff]  ;;  %v316_v60 = vadd.f32 %v300_v49, %v220_v44  ;;  %v175_v0 = vld [vmem:[#allocation13 + $0x20] sm:$0xff]  ;;  %v160_v16 = vld [vmem:[#allocation2 + $0x28] sm:$0xff] }
  0xaa   :  { %v206_v48 = vld [vmem:[#allocation11 + $0x18] sm:$0xff]  ;;  %v190_v50 = vmul.f32 %v174_v47, %v158_v46  ;;  %v396_v55 = vmul.f32 %v380_v42, %v364_v45  ;;  %v207_v1 = vld [vmem:[#allocation11 + $0x20] sm:$0xff]  ;;  %v191_v3 = vmul.f32 %v175_v0, %v159_v63  ;;  %v176_v17 = vld [vmem:[#allocation13 + $0x28] sm:$0xff]  ;;  %p825_p6 = pnand %p824_p5, %p818_p2 }
  0xab   :  { %v411_v37 = vadd.f32 %v395_v21, %v315_v26  ;;  %v238_v51 = vld [vmem:[#allocation5 + $0x18] sm:$0xff]  ;;  %v413_v54 = vadd.f32 %v397_v38, %v317_v43  ;;  %v239_v4 = vld [vmem:[#allocation5 + $0x20] sm:$0xff]  ;;  %v208_v18 = vld [vmem:[#allocation11 + $0x28] sm:$0xff]  ;;  %v192_v20 = vmul.f32 %v176_v17, %v160_v16 }
  0xac   :  { %v254_v52 = vld [vmem:[#allocation14 + $0x18] sm:$0xff]  ;;  %v222_v61 = vmul.f32 %v206_v48, %v190_v50  ;;  %v255_v5 = vld [vmem:[#allocation14 + $0x20] sm:$0xff]  ;;  %v412_v7 = vadd.f32 %v396_v55, %v316_v60  ;;  %v223_v14 = vmul.f32 %v207_v1, %v191_v3  ;;  %v240_v21 = vld [vmem:[#allocation5 + $0x28] sm:$0xff] }
  0xad   :  { %427 = vadd.xlane.f32.xlu0 %v411_v37  ;;  %v286_v53 = vld [vmem:[#allocation10 + $0x18] sm:$0xff]  ;;  %v270_v56 = vmul.f32 %v254_v52, %v238_v51  ;;  %431 = vadd.xlane.f32.xlu1 %v413_v54  ;;  %v287_v6 = vld [vmem:[#allocation10 + $0x20] sm:$0xff]  ;;  %v271_v9 = vmul.f32 %v255_v5, %v239_v4  ;;  %v256_v22 = vld [vmem:[#allocation14 + $0x28] sm:$0xff]  ;;  %v224_v31 = vmul.f32 %v208_v18, %v192_v20 }
  0xae   :  { %v334_v57 = vld [vmem:[#allocation7 + $0x18] sm:$0xff]  ;;  %v335_v10 = vld [vmem:[#allocation7 + $0x20] sm:$0xff]  ;;  %v288_v23 = vld [vmem:[#allocation10 + $0x28] sm:$0xff]  ;;  %v272_v26 = vmul.f32 %v256_v22, %v240_v21 }
  0xaf   :  { %v350_v58 = vld [vmem:[#allocation16 + $0x18] sm:$0xff]  ;;  %v302_v2 = vmul.f32 %v286_v53, %v270_v56  ;;  %v351_v11 = vld [vmem:[#allocation16 + $0x20] sm:$0xff]  ;;  %v303_v19 = vmul.f32 %v287_v6, %v271_v9  ;;  %v336_v27 = vld [vmem:[#allocation7 + $0x28] sm:$0xff] }
  0xb0   :  { %v382_v59 = vld [vmem:[#allocation8 + $0x18] sm:$0xff]  ;;  %v366_v62 = vmul.f32 %v350_v58, %v334_v57  ;;  %v383_v12 = vld [vmem:[#allocation8 + $0x20] sm:$0xff]  ;;  %v367_v15 = vmul.f32 %v351_v11, %v335_v10  ;;  %v352_v28 = vld [vmem:[#allocation16 + $0x28] sm:$0xff]  ;;  %v304_v36 = vmul.f32 %v288_v23, %v272_v26 }
  0xb1   :  { %v318_v13 = vadd.f32 %v302_v2, %v222_v61  ;;  %429 = vadd.xlane.f32.xlu0 %v412_v7  ;;  %v384_v29 = vld [vmem:[#allocation8 + $0x28] sm:$0xff]  ;;  %v319_v30 = vadd.f32 %v303_v19, %v223_v14  ;;  %v368_v32 = vmul.f32 %v352_v28, %v336_v27  ;;  %v161_v33 = vld [vmem:[#allocation2 + $0x30] sm:$0xff]  ;;  %v162_v50 = vld [vmem:[#allocation2 + $0x38] sm:$0xff] }
  0xb2   :  { %v398_v8 = vmul.f32 %v382_v59, %v366_v62  ;;  %v399_v25 = vmul.f32 %v383_v12, %v367_v15  ;;  %v177_v34 = vld [vmem:[#allocation13 + $0x30] sm:$0xff]  ;;  %v320_v47 = vadd.f32 %v304_v36, %v224_v31  ;;  %v178_v51 = vld [vmem:[#allocation13 + $0x38] sm:$0xff]  ;;  %v163_v3 = vld [vmem:[#allocation2 + $0x40] sm:$0xff] }
  0xb3   :  { %v209_v35 = vld [vmem:[#allocation11 + $0x30] sm:$0xff]  ;;  %v193_v37 = vmul.f32 %v177_v34, %v161_v33  ;;  %v400_v42 = vmul.f32 %v384_v29, %v368_v32  ;;  %v210_v52 = vld [vmem:[#allocation11 + $0x38] sm:$0xff]  ;;  %v194_v54 = vmul.f32 %v178_v51, %v162_v50  ;;  %v179_v4 = vld [vmem:[#allocation13 + $0x40] sm:$0xff] }
  0xb4   :  { %v414_v24 = vadd.f32 %v398_v8, %v318_v13  ;;  %v241_v38 = vld [vmem:[#allocation5 + $0x30] sm:$0xff]  ;;  %v415_v41 = vadd.f32 %v399_v25, %v319_v30  ;;  %v242_v55 = vld [vmem:[#allocation5 + $0x38] sm:$0xff]  ;;  %v211_v5 = vld [vmem:[#allocation11 + $0x40] sm:$0xff]  ;;  %v195_v7 = vmul.f32 %v179_v4, %v163_v3 }
  0xb5   :  { %v257_v39 = vld [vmem:[#allocation14 + $0x30] sm:$0xff]  ;;  %v225_v48 = vmul.f32 %v209_v35, %v193_v37  ;;  %v258_v56 = vld [vmem:[#allocation14 + $0x38] sm:$0xff]  ;;  %v416_v58 = vadd.f32 %v400_v42, %v320_v47  ;;  %v226_v1 = vmul.f32 %v210_v52, %v194_v54  ;;  %v243_v8 = vld [vmem:[#allocation5 + $0x40] sm:$0xff] }
  0xb6   :  { %433 = vadd.xlane.f32.xlu1 %v414_v24  ;;  %v289_v40 = vld [vmem:[#allocation10 + $0x30] sm:$0xff]  ;;  %v273_v43 = vmul.f32 %v257_v39, %v241_v38  ;;  %435 = vadd.xlane.f32.xlu0 %v415_v41  ;;  %v290_v57 = vld [vmem:[#allocation10 + $0x38] sm:$0xff]  ;;  %v274_v60 = vmul.f32 %v258_v56, %v242_v55  ;;  %v259_v9 = vld [vmem:[#allocation14 + $0x40] sm:$0xff]  ;;  %v227_v18 = vmul.f32 %v211_v5, %v195_v7 }
  0xb7   :  { %v337_v44 = vld [vmem:[#allocation7 + $0x30] sm:$0xff]  ;;  %v338_v61 = vld [vmem:[#allocation7 + $0x38] sm:$0xff]  ;;  %v291_v10 = vld [vmem:[#allocation10 + $0x40] sm:$0xff]  ;;  %v275_v13 = vmul.f32 %v259_v9, %v243_v8 }
  0xb8   :  { %v353_v45 = vld [vmem:[#allocation16 + $0x30] sm:$0xff]  ;;  %v305_v53 = vmul.f32 %v289_v40, %v273_v43  ;;  %v354_v62 = vld [vmem:[#allocation16 + $0x38] sm:$0xff]  ;;  %v306_v6 = vmul.f32 %v290_v57, %v274_v60  ;;  %v339_v14 = vld [vmem:[#allocation7 + $0x40] sm:$0xff] }
  0xb9   :  { %v385_v46 = vld [vmem:[#allocation8 + $0x30] sm:$0xff]  ;;  %v369_v49 = vmul.f32 %v353_v45, %v337_v44  ;;  %v386_v63 = vld [vmem:[#allocation8 + $0x38] sm:$0xff]  ;;  %v370_v2 = vmul.f32 %v354_v62, %v338_v61  ;;  %v355_v15 = vld [vmem:[#allocation16 + $0x40] sm:$0xff]  ;;  %v307_v23 = vmul.f32 %v291_v10, %v275_v13 }
  0xba   :  { %v321_v0 = vadd.f32 %v305_v53, %v225_v48  ;;  %437 = vadd.xlane.f32.xlu1 %v416_v58  ;;  %v387_v16 = vld [vmem:[#allocation8 + $0x40] sm:$0xff]  ;;  %v322_v17 = vadd.f32 %v306_v6, %v226_v1  ;;  %v371_v19 = vmul.f32 %v355_v15, %v339_v14  ;;  %v164_v20 = vld [vmem:[#allocation2 + $0x48] sm:$0xff]  ;;  %v165_v37 = vld [vmem:[#allocation2 + $0x50] sm:$0xff] }
  0xbb   :  { %v401_v59 = vmul.f32 %v385_v46, %v369_v49  ;;  %v402_v12 = vmul.f32 %v386_v63, %v370_v2  ;;  %v180_v21 = vld [vmem:[#allocation13 + $0x48] sm:$0xff]  ;;  %v323_v34 = vadd.f32 %v307_v23, %v227_v18  ;;  %v181_v38 = vld [vmem:[#allocation13 + $0x50] sm:$0xff]  ;;  %v166_v54 = vld [vmem:[#allocation2 + $0x58] sm:$0xff] }
  0xbc   :  { %v212_v22 = vld [vmem:[#allocation11 + $0x48] sm:$0xff]  ;;  %v196_v24 = vmul.f32 %v180_v21, %v164_v20  ;;  %v403_v29 = vmul.f32 %v387_v16, %v371_v19  ;;  %v213_v39 = vld [vmem:[#allocation11 + $0x50] sm:$0xff]  ;;  %v197_v41 = vmul.f32 %v181_v38, %v165_v37  ;;  %v182_v55 = vld [vmem:[#allocation13 + $0x58] sm:$0xff] }
  0xbd   :  { %v417_v11 = vadd.f32 %v401_v59, %v321_v0  ;;  %v244_v25 = vld [vmem:[#allocation5 + $0x48] sm:$0xff]  ;;  %v418_v28 = vadd.f32 %v402_v12, %v322_v17  ;;  %v245_v42 = vld [vmem:[#allocation5 + $0x50] sm:$0xff]  ;;  %v214_v56 = vld [vmem:[#allocation11 + $0x58] sm:$0xff]  ;;  %v198_v58 = vmul.f32 %v182_v55, %v166_v54 }
  0xbe   :  { %v260_v26 = vld [vmem:[#allocation14 + $0x48] sm:$0xff]  ;;  %v228_v35 = vmul.f32 %v212_v22, %v196_v24  ;;  %v261_v43 = vld [vmem:[#allocation14 + $0x50] sm:$0xff]  ;;  %v419_v45 = vadd.f32 %v403_v29, %v323_v34  ;;  %v229_v52 = vmul.f32 %v213_v39, %v197_v41  ;;  %v246_v59 = vld [vmem:[#allocation5 + $0x58] sm:$0xff] }
  0xbf   :  { %439 = vadd.xlane.f32.xlu0 %v417_v11  ;;  %v292_v27 = vld [vmem:[#allocation10 + $0x48] sm:$0xff]  ;;  %v276_v30 = vmul.f32 %v260_v26, %v244_v25  ;;  %441 = vadd.xlane.f32.xlu1 %v418_v28  ;;  %v293_v44 = vld [vmem:[#allocation10 + $0x50] sm:$0xff]  ;;  %v277_v47 = vmul.f32 %v261_v43, %v245_v42  ;;  %v262_v60 = vld [vmem:[#allocation14 + $0x58] sm:$0xff]  ;;  %v230_v5 = vmul.f32 %v214_v56, %v198_v58 }
  0xc0   :  { %v340_v31 = vld [vmem:[#allocation7 + $0x48] sm:$0xff]  ;;  %v341_v48 = vld [vmem:[#allocation7 + $0x50] sm:$0xff]  ;;  %v294_v61 = vld [vmem:[#allocation10 + $0x58] sm:$0xff]  ;;  %v278_v0 = vmul.f32 %v262_v60, %v246_v59 }
  0xc1   :  { %v356_v32 = vld [vmem:[#allocation16 + $0x48] sm:$0xff]  ;;  %v308_v40 = vmul.f32 %v292_v27, %v276_v30  ;;  %v357_v49 = vld [vmem:[#allocation16 + $0x50] sm:$0xff]  ;;  %v309_v57 = vmul.f32 %v293_v44, %v277_v47  ;;  %v342_v1 = vld [vmem:[#allocation7 + $0x58] sm:$0xff] }
  0xc2   :  { %v388_v33 = vld [vmem:[#allocation8 + $0x48] sm:$0xff]  ;;  %v372_v36 = vmul.f32 %v356_v32, %v340_v31  ;;  %v389_v50 = vld [vmem:[#allocation8 + $0x50] sm:$0xff]  ;;  %v373_v53 = vmul.f32 %v357_v49, %v341_v48  ;;  %v358_v2 = vld [vmem:[#allocation16 + $0x58] sm:$0xff]  ;;  %v310_v10 = vmul.f32 %v294_v61, %v278_v0 }
  0xc3   :  { %v324_v51 = vadd.f32 %v308_v40, %v228_v35  ;;  %443 = vadd.xlane.f32.xlu0 %v419_v45  ;;  %v390_v3 = vld [vmem:[#allocation8 + $0x58] sm:$0xff]  ;;  %v325_v4 = vadd.f32 %v309_v57, %v229_v52  ;;  %v374_v6 = vmul.f32 %v358_v2, %v342_v1  ;;  %v167_v7 = vld [vmem:[#allocation2 + $0x60] sm:$0xff]  ;;  %v168_v24 = vld [vmem:[#allocation2 + $0x68] sm:$0xff] }
  0xc4   :  { %v404_v46 = vmul.f32 %v388_v33, %v372_v36  ;;  %v405_v63 = vmul.f32 %v389_v50, %v373_v53  ;;  %v183_v8 = vld [vmem:[#allocation13 + $0x60] sm:$0xff]  ;;  %v326_v21 = vadd.f32 %v310_v10, %v230_v5  ;;  %v184_v25 = vld [vmem:[#allocation13 + $0x68] sm:$0xff]  ;;  %v169_v41 = vld [vmem:[#allocation2 + $0x70] sm:$0xff] }
  0xc5   :  { %v215_v9 = vld [vmem:[#allocation11 + $0x60] sm:$0xff]  ;;  %v199_v11 = vmul.f32 %v183_v8, %v167_v7  ;;  %v406_v16 = vmul.f32 %v390_v3, %v374_v6  ;;  %v216_v26 = vld [vmem:[#allocation11 + $0x68] sm:$0xff]  ;;  %v200_v28 = vmul.f32 %v184_v25, %v168_v24  ;;  %v185_v42 = vld [vmem:[#allocation13 + $0x70] sm:$0xff] }
  0xc6   :  { %v420_v62 = vadd.f32 %v404_v46, %v324_v51  ;;  %v247_v12 = vld [vmem:[#allocation5 + $0x60] sm:$0xff]  ;;  %v421_v15 = vadd.f32 %v405_v63, %v325_v4  ;;  %v248_v29 = vld [vmem:[#allocation5 + $0x68] sm:$0xff]  ;;  %v217_v43 = vld [vmem:[#allocation11 + $0x70] sm:$0xff]  ;;  %v201_v45 = vmul.f32 %v185_v42, %v169_v41 }
  0xc7   :  { %v263_v13 = vld [vmem:[#allocation14 + $0x60] sm:$0xff]  ;;  %v231_v22 = vmul.f32 %v215_v9, %v199_v11  ;;  %v264_v30 = vld [vmem:[#allocation14 + $0x68] sm:$0xff]  ;;  %v422_v32 = vadd.f32 %v406_v16, %v326_v21  ;;  %v232_v39 = vmul.f32 %v216_v26, %v200_v28  ;;  %v249_v46 = vld [vmem:[#allocation5 + $0x70] sm:$0xff]  ;;  %v475_v16 = vlaneseq }
  0xc8   :  { %445 = vadd.xlane.f32.xlu1 %v420_v62  ;;  %v295_v14 = vld [vmem:[#allocation10 + $0x60] sm:$0xff]  ;;  %v279_v17 = vmul.f32 %v263_v13, %v247_v12  ;;  %447 = vadd.xlane.f32.xlu0 %v421_v15  ;;  %v296_v31 = vld [vmem:[#allocation10 + $0x68] sm:$0xff]  ;;  %v280_v34 = vmul.f32 %v264_v30, %v248_v29  ;;  %v265_v47 = vld [vmem:[#allocation14 + $0x70] sm:$0xff]  ;;  %v233_v56 = vmul.f32 %v217_v43, %v201_v45 }
  0xc9   :  { %v343_v18 = vld [vmem:[#allocation7 + $0x60] sm:$0xff]  ;;  %v344_v35 = vld [vmem:[#allocation7 + $0x68] sm:$0xff]  ;;  %v297_v48 = vld [vmem:[#allocation10 + $0x70] sm:$0xff]  ;;  %v281_v51 = vmul.f32 %v265_v47, %v249_v46  ;;  %v1079_v21 = vshrl.u32 %v475_v16, 7 }
  0xca   :  { %v359_v19 = vld [vmem:[#allocation16 + $0x60] sm:$0xff]  ;;  %v311_v27 = vmul.f32 %v295_v14, %v279_v17  ;;  %v360_v36 = vld [vmem:[#allocation16 + $0x68] sm:$0xff]  ;;  %v312_v44 = vmul.f32 %v296_v31, %v280_v34  ;;  %v345_v52 = vld [vmem:[#allocation7 + $0x70] sm:$0xff] }
  0xcb   :  { %v391_v20 = vld [vmem:[#allocation8 + $0x60] sm:$0xff]  ;;  %v375_v23 = vmul.f32 %v359_v19, %v343_v18  ;;  %v392_v37 = vld [vmem:[#allocation8 + $0x68] sm:$0xff]  ;;  %v376_v40 = vmul.f32 %v360_v36, %v344_v35  ;;  %v361_v53 = vld [vmem:[#allocation16 + $0x70] sm:$0xff]  ;;  %v313_v61 = vmul.f32 %v297_v48, %v281_v51  ;;  %v1076_v18 = vand.u32 127, %v475_v16 }
  0xcc   :  { %v327_v38 = vadd.f32 %v311_v27, %v231_v22  ;;  %449 = vadd.xlane.f32.xlu1 %v422_v32  ;;  %v393_v54 = vld [vmem:[#allocation8 + $0x70] sm:$0xff]  ;;  %v328_v55 = vadd.f32 %v312_v44, %v232_v39  ;;  %v377_v57 = vmul.f32 %v361_v53, %v345_v52  ;;  %v170_v58 = vld [vmem:[#allocation2 + $0x78] sm:$0xff] }
  0xcd   :  { %v407_v33 = vmul.f32 %v391_v20, %v375_v23  ;;  %v408_v50 = vmul.f32 %v392_v37, %v376_v40  ;;  %v186_v59 = vld [vmem:[#allocation13 + $0x78] sm:$0xff]  ;;  %v329_v8 = vadd.f32 %v313_v61, %v233_v56  ;;  %v481_v20 = vadd.s32 4294967288, %v1076_v18 }
  0xce   :  { %v218_v60 = vld [vmem:[#allocation11 + $0x78] sm:$0xff]  ;;  %v202_v62 = vmul.f32 %v186_v59, %v170_v58  ;;  %v409_v3 = vmul.f32 %v393_v54, %v377_v57  ;;  %v488_v24 = vadd.s32 4294967280, %v1076_v18  ;;  %v479_v26 = vsub.s32 %v1076_v18, %v1079_v21 }
  0xcf   :  { %v423_v49 = vadd.f32 %v407_v33, %v327_v38  ;;  %v250_v63 = vld [vmem:[#allocation5 + $0x78] sm:$0xff]  ;;  %v424_v2 = vadd.f32 %v408_v50, %v328_v55  ;;  %v484_v23 = vsub.s32 %v481_v20, %v1079_v21  ;;  %v495_v27 = vadd.s32 4294967272, %v1076_v18 }
  0xd0   :  { %v266_v0 = vld [vmem:[#allocation14 + $0x78] sm:$0xff]  ;;  %v234_v9 = vmul.f32 %v218_v60, %v202_v62  ;;  %v425_v12 = vadd.f32 %v409_v3, %v329_v8  ;;  %v491_v30 = vsub.s32 %v488_v24, %v1079_v21  ;;  %v502_v31 = vadd.s32 4294967264, %v1076_v18 }
  0xd1   :  { %451 = vadd.xlane.f32.xlu0 %v423_v49  ;;  %v298_v1 = vld [vmem:[#allocation10 + $0x78] sm:$0xff]  ;;  %v282_v4 = vmul.f32 %v266_v0, %v250_v63  ;;  %453 = vadd.xlane.f32.xlu1 %v424_v2  ;;  %v498_v33 = vsub.s32 %v495_v27, %v1079_v21  ;;  %v509_v36 = vadd.s32 4294967256, %v1076_v18  ;;  %v516_v39 = vadd.s32 4294967248, %v1076_v18 }
  0xd2   :  { %v346_v5 = vld [vmem:[#allocation7 + $0x78] sm:$0xff]  ;;  %v505_v38 = vsub.s32 %v502_v31, %v1079_v21  ;;  %v523_v44 = vadd.s32 4294967240, %v1076_v18  ;;  %v530_v48 = vadd.s32 4294967232, %v1076_v18  ;;  %v537_v53 = vadd.s32 4294967224, %v1076_v18 }
  0xd3   :  { %v362_v6 = vld [vmem:[#allocation16 + $0x78] sm:$0xff]  ;;  %v314_v11 = vmul.f32 %v298_v1, %v282_v4  ;;  %v512_v43 = vsub.s32 %v509_v36, %v1079_v21  ;;  %v519_v46 = vsub.s32 %v516_v39, %v1079_v21  ;;  %v544_v57 = vadd.s32 4294967216, %v1076_v18 }
  0xd4   :  { %v394_v7 = vld [vmem:[#allocation8 + $0x78] sm:$0xff]  ;;  %v378_v10 = vmul.f32 %v362_v6, %v346_v5  ;;  %v526_v51 = vsub.s32 %v523_v44, %v1079_v21  ;;  %v533_v56 = vsub.s32 %v530_v48, %v1079_v21  ;;  %v540_v61 = vsub.s32 %v537_v53, %v1079_v21 }
  0xd5   :  { %v330_v14 = vadd.f32 %v314_v11, %v234_v9  ;;  %455 = vadd.xlane.f32.xlu0 %v425_v12  ;;  %v551_v62 = vadd.s32 4294967208, %v1076_v18  ;;  %v547_v1 = vsub.s32 %v544_v57, %v1079_v21  ;;  %v558_v2 = vadd.s32 4294967200, %v1076_v18 }
  0xd6   :  { %v410_v13 = vmul.f32 %v394_v7, %v378_v10  ;;  %v565_v7 = vadd.s32 4294967192, %v1076_v18  ;;  %v572_v12 = vadd.s32 4294967184, %v1076_v18  ;;  %v579_v20 = vadd.s32 4294967176, %v1076_v18 }
  0xd7   :  { %v554_v6 = vsub.s32 %v551_v62, %v1079_v21  ;;  %v561_v11 = vsub.s32 %v558_v2, %v1079_v21 }
  0xd8   :  { %v426_v15 = vadd.f32 %v410_v13, %v330_v14  ;;  %v568_v16 = vsub.s32 %v565_v7, %v1079_v21 }
  0xda   :  { %457 = vadd.xlane.f32.xlu1 %v426_v15 }
 0x13a   :  { %v428_v17 = vpop.xlane.xlu0 %427  ;;  %v432_v19 = vpop.xlane.xlu1 %431 }
 0x13b   :  { %v480_v32 = vrot.slane %v428_v17, %v479_v26  ;;  %v492_v37 = vrot.slane %v432_v19, %v491_v30 }
 0x13e   :  { %v430_v22 = vpop.xlane.xlu0 %429 }
 0x13f   :  { %v485_v28 = vrot.slane %v430_v22, %v484_v23  ;;  %v575_v23 = vsub.s32 %v572_v12, %v1079_v21 }
 0x141   :  { %v487_v35 = vsel %vm486_vm0, %v485_v28, %v480_v32  ;;  %v582_v28 = vsub.s32 %v579_v20, %v1079_v21 }
 0x142   :  { %v494_v42 = vsel %vm493_vm1, %v492_v37, %v487_v35 }
 0x143   :  { %v434_v25 = vpop.xlane.xlu1 %433  ;;  %v436_v29 = vpop.xlane.xlu0 %435 }
 0x144   :  { %v499_v40 = vrot.slane %v434_v25, %v498_v33  ;;  %v506_v45 = vrot.slane %v436_v29, %v505_v38 }
 0x146   :  { %v501_v49 = vsel %vm500_vm2, %v499_v40, %v494_v42 }
 0x147   :  { %v438_v34 = vpop.xlane.xlu1 %437  ;;  %v508_v54 = vsel %vm507_vm3, %v506_v45, %v501_v49 }
 0x148   :  { %v513_v50 = vrot.slane %v438_v34, %v512_v43 }
 0x14a   :  { %v515_v59 = vsel %vm514_vm4, %v513_v50, %v508_v54 }
 0x14c   :  { %v440_v41 = vpop.xlane.xlu0 %439  ;;  %v442_v47 = vpop.xlane.xlu1 %441 }
 0x14d   :  { %v520_v55 = vrot.slane %v440_v41, %v519_v46  ;;  %v527_v60 = vrot.slane %v442_v47, %v526_v51 }
 0x14f   :  { %v522_v63 = vsel %vm521_vm5, %v520_v55, %v515_v59 }
 0x150   :  { %v444_v52 = vpop.xlane.xlu0 %443  ;;  %v529_v4 = vsel %vm528_vm6, %v527_v60, %v522_v63 }
 0x151   :  { %v534_v0 = vrot.slane %v444_v52, %v533_v56 }
 0x153   :  { %v536_v8 = vsel %vm535_vm7, %v534_v0, %v529_v4 }
 0x155   :  { %v446_v58 = vpop.xlane.xlu1 %445  ;;  %v448_v3 = vpop.xlane.xlu0 %447 }
 0x156   :  { %v541_v5 = vrot.slane %v446_v58, %v540_v61  ;;  %v548_v9 = vrot.slane %v448_v3, %v547_v1 }
 0x158   :  { %v543_v13 = vsel %vm542_vm8, %v541_v5, %v536_v8 }
 0x159   :  { %v450_v10 = vpop.xlane.xlu1 %449  ;;  %v550_v17 = vsel %vm549_vm9, %v548_v9, %v543_v13 }
 0x15a   :  { %v555_v14 = vrot.slane %v450_v10, %v554_v6 }
 0x15c   :  { %v557_v24 = vsel %vm556_vm10, %v555_v14, %v550_v17 }
 0x15e   :  { %v452_v15 = vpop.xlane.xlu0 %451  ;;  %v454_v22 = vpop.xlane.xlu1 %453 }
 0x15f   :  { %v562_v19 = vrot.slane %v452_v15, %v561_v11  ;;  %v569_v25 = vrot.slane %v454_v22, %v568_v16 }
 0x161   :  { %v564_v26 = vsel %vm563_vm11, %v562_v19, %v557_v24 }
 0x162   :  { %v456_v27 = vpop.xlane.xlu0 %455  ;;  %v571_v30 = vsel %vm570_vm12, %v569_v25, %v564_v26 }
 0x163   :  { %v576_v29 = vrot.slane %v456_v27, %v575_v23 }
 0x165   :  { %v578_v32 = vsel %vm577_vm13, %v576_v29, %v571_v30 }
 0x167   :  { %v458_v31 = vpop.xlane.xlu1 %457 }
 0x168   :  { %v583_v33 = vrot.slane %v458_v31, %v582_v28 }
 0x16a   :  { %v585_v18 = vsel %vm584_vm14, %v583_v33, %v578_v32 }
 0x16b   :  { %587 = vst [vmem:[#allocation17] sm:$0x1] %v585_v18 }
 0x16c   :  { %828 = shalt.err (!%p825_p6)
}
 0x16d   :  { %s829_s20 = scalar_lea.hbm %s1133_s9, 16 }
 0x16e   :  { %p830_p7 = scmp.ne.s32.totalorder %s1133_s9, %s829_s20  ;;  %p833_p8 = scmp.lt.u32.totalorder %s829_s20, %s1133_s9 }
 0x170   :  { %p835_p9 = pnand %p833_p8, %p830_p7 }
 0x172   :  { %838 = shalt.err (!%p835_p9)
}
 0x173   :  { %597 = dma.vmem_to_hbm [thread:$0]  %s595_s21, 16, %s1133_s9, [#allocation4]  }
 0x174   :  { %849 = dma.done.wait [#allocation4], 16  }
 0x175   :  { %850 = vsyncadd [#allocation4], 4294967280 }
 0x176   :  { %601 = vsyncpa [#allocation3], 1 }
 0x177   :  { %602 = vsyncpa [#allocation6], 1 }
 0x178   :  { %603 = vsyncpa [#allocation9], 1 }
 0x179   :  { %604 = vsyncpa [#allocation12], 1 }
 0x17a   :  { %605 = vsyncpa [#allocation15], 1 }
 0x17b   :  { %606 = vsyncpa [#allocation4], 1 }

</bundles_post_ra>
